<compile_context>
chip_gen: v7x
topology: tpu7x:2x2x1
jax: 0.10.0
libtpu: 0.0.40
codegen_flags: <defaults>
</compile_context>

<pallas_src>
import jax
import jax.numpy as jnp
from jax.experimental import pallas as pl
from jax.experimental.pallas import tpu as pltpu

_LANE = 128


def _sse_partial_kernel(pred_ref, tgt_ref, part_ref):
    """Per-block partial sum of squared errors, folded to one (8, 128) tile."""
    diff = pred_ref[...].astype(jnp.float32) - tgt_ref[...].astype(jnp.float32)
    sq = diff * diff
    r = sq.shape[0]
    # Reshape groups every 8 sublane-rows into one vreg slab; summing over the
    # leading axis is elementwise vreg adds (VPU), never a cross-lane reduce.
    part = jnp.sum(sq.reshape(r // 8, 8, _LANE), axis=0)  # (8, 128) f32
    part_ref[0] = part


def _cdiv(a, b):
    return -(-a // b)


def acoustic_predictor_loss(outputs, targets, offset=1.0):
    """Pallas TPU equivalent of AcousticPredictorLoss.forward.

    `offset` is kept for API parity; the reference forward() never uses it.
    """
    del offset  # unused in the reference forward()
    assert outputs.shape == targets.shape
    total_n = 1
    for d in outputs.shape:
        total_n *= int(d)

    it_out = jnp.dtype(outputs.dtype).itemsize
    it_tgt = jnp.dtype(targets.dtype).itemsize
    # Sublane multiple required by the narrower dtype (8 for 4B, 16 for 2B, 32 for 1B).
    sub_mult = max(8, 32 // min(it_out, it_tgt))
    # ~4 MiB per input block -> 2 inputs x 2 pipeline buffers ~ 16 MiB VMEM.
    target_block_bytes = 4 * 1024 * 1024
    max_tile_rows = max(
        sub_mult,
        (target_block_bytes // (_LANE * max(it_out, it_tgt))) // sub_mult * sub_mult,
    )

    rows_needed = max(1, _cdiv(total_n, _LANE))
    grid = _cdiv(rows_needed, max_tile_rows)
    tile_rows = _cdiv(_cdiv(rows_needed, grid), sub_mult) * sub_mult
    padded_rows = grid * tile_rows

    def _to_lane_dense(x):
        flat = x.reshape(-1)
        pad = padded_rows * _LANE - flat.shape[0]
        if pad:
            # Zero padding on both operands -> diff == 0 -> no loss contribution.
            flat = jnp.pad(flat, (0, pad))
        return flat.reshape(padded_rows, _LANE)

    pred2d = _to_lane_dense(outputs)
    tgt2d = _to_lane_dense(targets)

    bytes_accessed = padded_rows * _LANE * (it_out + it_tgt) + grid * 8 * _LANE * 4
    partials = pl.pallas_call(
        _sse_partial_kernel,
        out_shape=jax.ShapeDtypeStruct((grid, 8, _LANE), jnp.float32),
        grid_spec=pltpu.PrefetchScalarGridSpec(
            num_scalar_prefetch=0,
            grid=(grid,),
            in_specs=[
                pl.BlockSpec((tile_rows, _LANE), lambda i: (i, 0)),
                pl.BlockSpec((tile_rows, _LANE), lambda i: (i, 0)),
            ],
            out_specs=pl.BlockSpec((1, 8, _LANE), lambda i: (i, 0, 0)),
        ),
        compiler_params=pltpu.CompilerParams(
            dimension_semantics=("parallel",),
            vmem_limit_bytes=32 * 1024 * 1024,
        ),
        cost_estimate=pl.CostEstimate(
            flops=3 * padded_rows * _LANE,
            transcendentals=0,
            bytes_accessed=bytes_accessed,
        ),
    )(pred2d, tgt2d)

    # Tiny final reduction (grid * 1024 f32 values) + mean, in plain JAX.
    return jnp.sum(partials) / jnp.float32(total_n)


if __name__ == "__main__":
    key = jax.random.PRNGKey(0)
    k1, k2, k3, k4 = jax.random.split(key, 4)

    # Canonical shape: (B, T) durations.
    B, T = 4, 256
    # outputs: predicted durations in log domain (float)
    outputs = jax.random.normal(k1, (B, T), dtype=jnp.float32)
    # targets: ground-truth durations in linear domain (MSELoss needs floats)
    targets = jax.random.randint(k2, (B, T), 0, 10).astype(jnp.float32)

    loss = acoustic_predictor_loss(outputs, targets)
    loss = jax.block_until_ready(loss)
    ref = jnp.mean((outputs - targets) ** 2)
    assert jnp.allclose(loss, ref, rtol=1e-5, atol=1e-5), (loss, ref)

    # Ragged (non-128-multiple) shape exercises the zero-padding path.
    B2, T2 = 3, 173
    outputs2 = jax.random.normal(k3, (B2, T2), dtype=jnp.float32)
    targets2 = jax.random.randint(k4, (B2, T2), 0, 10).astype(jnp.float32)
    loss2 = jax.block_until_ready(acoustic_predictor_loss(outputs2, targets2))
    ref2 = jnp.mean((outputs2 - targets2) ** 2)
    assert jnp.allclose(loss2, ref2, rtol=1e-5, atol=1e-5), (loss2, ref2)

    print("KERNEL_OK")
</pallas_src>

<mosaic_0001>
module attributes {stable_mosaic.version = 11 : i64} {
  func.func @_sse_partial_kernel(%arg0: i32, %arg1: memref<8x128xf32, #tpu.memory_space<vmem>>, %arg2: memref<8x128xf32, #tpu.memory_space<vmem>>, %arg3: memref<1x8x128xf32, #tpu.memory_space<vmem>>) attributes {dimension_semantics = [#tpu.dimension_semantics<parallel>], iteration_bounds = array<i64: 1>, scalar_prefetch = 0 : i64, scratch_operands = 0 : i64, tpu.core_type = #tpu.core_type<tc>, window_params = [{transform_indices = @transform_0, window_bounds = array<i64: 8, 128>}, {transform_indices = @transform_1, window_bounds = array<i64: 8, 128>}, {transform_indices = @transform_2, window_bounds = array<i64: 1, 8, 128>}]} {
    %c0 = arith.constant 0 : index
    %c0_0 = arith.constant 0 : index
    %0 = vector.load %arg1[%c0, %c0_0] : memref<8x128xf32, #tpu.memory_space<vmem>>, vector<8x128xf32>
    %c0_1 = arith.constant 0 : index
    %c0_2 = arith.constant 0 : index
    %1 = vector.load %arg2[%c0_1, %c0_2] : memref<8x128xf32, #tpu.memory_space<vmem>>, vector<8x128xf32>
    %2 = arith.subf %0, %1 : vector<8x128xf32>
    %3 = arith.mulf %2, %2 : vector<8x128xf32>
    %4 = vector.shape_cast %3 : vector<8x128xf32> to vector<1x8x128xf32>
    %cst = arith.constant dense<0.000000e+00> : vector<8x128xf32>
    %5 = vector.multi_reduction <add>, %4, %cst [0] : vector<1x8x128xf32> to vector<8x128xf32>
    %c0_3 = arith.constant 0 : index
    %c0_4 = arith.constant 0 : index
    %c0_5 = arith.constant 0 : index
    %6 = vector.load %arg3[%c0_3, %c0_4, %c0_5] : memref<1x8x128xf32, #tpu.memory_space<vmem>>, vector<1x8x128xf32>
    %7 = vector.shape_cast %6 : vector<1x8x128xf32> to vector<8x128xf32>
    %8 = vector.shape_cast %5 : vector<8x128xf32> to vector<1x8x128xf32>
    tpu.vector_store %arg3[%c0_3, %c0_4, %c0_5], %8 {strides = array<i32>} : memref<1x8x128xf32, #tpu.memory_space<vmem>>, vector<1x8x128xf32>,
    return
  }
  func.func @transform_0(%arg0: i32) -> (i32, i32) {
    %c0_i32 = arith.constant 0 : i32
    %c0_i32_0 = arith.constant 0 : i32
    return %arg0, %c0_i32 : i32, i32
  }
  func.func @transform_1(%arg0: i32) -> (i32, i32) {
    %c0_i32 = arith.constant 0 : i32
    %c0_i32_0 = arith.constant 0 : i32
    return %arg0, %c0_i32 : i32, i32
  }
  func.func @transform_2(%arg0: i32) -> (i32, i32, i32) {
    %c0_i32 = arith.constant 0 : i32
    %c0_i32_0 = arith.constant 0 : i32
    %c0_i32_1 = arith.constant 0 : i32
    return %arg0, %c0_i32, %c0_i32_0 : i32, i32, i32
  }
}

</mosaic_0001>

<bundles_post_ra>
// kernel: tpu_custom_call.1
= control target key start
LH: loop header
LB: loop body
LE: loop exit
PB: predicated region body
PF: predicated region fallthrough
CT: control target
= control target key end

     0   :  { %7 = vsyncpa [#allocation3], 0  ;;  %s187_s0 = inlined_call_operand.hbm [shape: f32[8,128], index: 0, kind: input, shape index: {}]   ;;  %s188_s1 = inlined_call_operand.hbm [shape: f32[8,128], index: 1, kind: input, shape index: {}]   ;;  %s189_s2 = inlined_call_operand.hbm [shape: f32[1,8,128], index: 2, kind: output, shape index: {}]  }
   0x1   :  { %8 = vsyncpa [#allocation6], 0 }
   0x2   :  { %9 = vsyncpa [#allocation4], 0  ;;  %s133_s9 = smov [#allocation2]   ;;  %s134_s11 = smov [#allocation5]  }
   0x3   :  { %s16_s10 = sshll.u32 %s133_s9, 4  ;;  %s26_s12 = sshll.u32 %s134_s11, 4  ;;  %s17_s10 = int_to_ptr.vmem [resolvable:$true] %s16_s10  ;;  %s27_s12 = int_to_ptr.vmem [resolvable:$true] %s26_s12 }
   0x4   :  { %s61_s15 = scalar_lea.hbm %s187_s0, 128 }
   0x5   :  { %p62_p0 = scmp.ne.s32.totalorder %s187_s0, %s61_s15  ;;  %p65_p1 = scmp.lt.u32.totalorder %s61_s15, %s187_s0 }
   0x7   :  { %p67_p2 = pnand %p65_p1, %p62_p0 }
   0x9   :  { %70 = shalt.err (!%p67_p2)
}
   0xa   :  { %s71_s20 = scalar_lea.vmem %s17_s10, 128  ;;  %p76_p4 = scmp.lt.s32.totalorder %s17_s10, %s17_s10 }
   0xb   :  { %p72_p3 = scmp.ne.s32.totalorder %s17_s10, %s71_s20  ;;  %p77_p5 = scmp.lt.s32.totalorder %s71_s20, %s71_s20 }
   0xd   :  { %p78_p6 = por %p77_p5, %p76_p4 }
   0xf   :  { %p79_p7 = pnand %p78_p6, %p72_p3 }
  0x11   :  { %82 = shalt.err (!%p79_p7)
}
  0x12   :  { %19 = dma.hbm_to_vmem [thread:$0]  %s187_s0, 128, %s17_s10, [#allocation3]  }
  0x13   :  { %s83_s25 = scalar_lea.hbm %s188_s1, 128 }
  0x14   :  { %p84_p8 = scmp.ne.s32.totalorder %s188_s1, %s83_s25  ;;  %p87_p9 = scmp.lt.u32.totalorder %s83_s25, %s188_s1 }
  0x16   :  { %p89_p10 = pnand %p87_p9, %p84_p8 }
  0x18   :  { %92 = shalt.err (!%p89_p10)
}
  0x19   :  { %s93_s30 = scalar_lea.vmem %s27_s12, 128  ;;  %p98_p12 = scmp.lt.s32.totalorder %s27_s12, %s27_s12 }
  0x1a   :  { %p94_p11 = scmp.ne.s32.totalorder %s27_s12, %s93_s30  ;;  %p99_p13 = scmp.lt.s32.totalorder %s93_s30, %s93_s30 }
  0x1c   :  { %p100_p0 = por %p99_p13, %p98_p12 }
  0x1e   :  { %p101_p1 = pnand %p100_p0, %p94_p11 }
  0x20   :  { %104 = shalt.err (!%p101_p1)
}
  0x21   :  { %29 = dma.hbm_to_vmem [thread:$0]  %s188_s1, 128, %s27_s12, [#allocation6]  }
  0x22   :  { %127 = dma.done.wait [#allocation3], 128  }
  0x23   :  { %128 = vsyncadd [#allocation3], 4294967168 }
  0x24   :  { %129 = dma.done.wait [#allocation6], 128  }
  0x25   :  { %130 = vsyncadd [#allocation6], 4294967168  ;;  %v36_v0 = vld [vmem:[#allocation2] sm:$0xff]  ;;  %v37_v1 = vld [vmem:[#allocation5] sm:$0xff]  ;;  %s135_s4 = smov [#allocation7]  }
  0x26   :  { %s48_s5 = sshll.u32 %s135_s4, 4  ;;  %v38_v2 = vsub.f32 %v36_v0, %v37_v1  ;;  %s49_s5 = int_to_ptr.vmem [resolvable:$true] %s48_s5 }
  0x27   :  { %s105_s6 = scalar_lea.vmem %s49_s5, 128  ;;  %p110_p3 = scmp.lt.s32.totalorder %s49_s5, %s49_s5 }
  0x28   :  { %v39_v3 = vmul.f32 %v38_v2, %v38_v2  ;;  %p106_p2 = scmp.ne.s32.totalorder %s49_s5, %s105_s6  ;;  %p111_p4 = scmp.lt.s32.totalorder %s105_s6, %s105_s6 }
  0x2a   :  { %41 = vst [vmem:[#allocation7] sm:$0xff] %v39_v3  ;;  %p112_p5 = por %p111_p4, %p110_p3 }
  0x2c   :  { %p113_p6 = pnand %p112_p5, %p106_p2 }
  0x2e   :  { %116 = shalt.err (!%p113_p6)
}
  0x2f   :  { %s117_s8 = scalar_lea.hbm %s189_s2, 128 }
  0x30   :  { %p118_p7 = scmp.ne.s32.totalorder %s189_s2, %s117_s8  ;;  %p121_p8 = scmp.lt.u32.totalorder %s117_s8, %s189_s2 }
  0x32   :  { %p123_p9 = pnand %p121_p8, %p118_p7 }
  0x34   :  { %126 = shalt.err (!%p123_p9)
}
  0x35   :  { %51 = dma.vmem_to_hbm [thread:$0]  %s49_s5, 128, %s189_s2, [#allocation4]  }
  0x36   :  { %131 = dma.done.wait [#allocation4], 128  }
  0x37   :  { %132 = vsyncadd [#allocation4], 4294967168 }
  0x38   :  { %55 = vsyncpa [#allocation3], 1 }
  0x39   :  { %56 = vsyncpa [#allocation6], 1 }
  0x3a   :  { %57 = vsyncpa [#allocation4], 1 }

</bundles_post_ra>
